<compile_context>
chip_gen: v6e
topology: v6e:2x2x1
jax: 0.10.0
libtpu: 0.0.40
codegen_flags: <defaults>
</compile_context>

<pallas_src>
import functools

import numpy as np
import jax
import jax.numpy as jnp
from jax.experimental import pallas as pl
from jax.experimental.pallas import tpu as pltpu


def _sconv_kernel(x_ref, w_ref, r_ref, b_ref, o_ref, *, n_cheb):
    """One grid step: out = relu(x + bias + sum_k kron(I_G, W_k) @ x @ R_k).

    x_ref: (rows, L) matmul dtype; w_ref: (K, rows, rows); r_ref: (K, L, L);
    b_ref: (rows, L) f32 lane-dense bias; o_ref: (rows, L) out dtype.
    """
    x = x_ref[...]
    acc = x.astype(jnp.float32) + b_ref[...]            # residual + bias in f32
    for k in range(n_cheb):                             # K is tiny: static unroll
        # channel mix: block-diagonal kron(I_G, W_k) fills the MXU M axis
        h = jnp.dot(w_ref[k], x, preferred_element_type=jnp.float32).astype(x.dtype)
        # node mix along the lane axis
        acc = acc + jnp.dot(h, r_ref[k], preferred_element_type=jnp.float32)
    o_ref[...] = jnp.maximum(acc, 0.0).astype(o_ref.dtype)


def _pick_group(n_items, c, *, lane, itemsize, target_rows, min_steps,
                max_block_bytes=4 << 20):
    """How many C-row items to pack per grid step (must divide n_items)."""
    divisors = [d for d in range(1, n_items + 1) if n_items % d == 0]
    cands = [d for d in divisors
             if d * c <= max(target_rows, c)
             and d * c * lane * itemsize <= max_block_bytes] or [1]
    # Prefer keeping >= min_steps grid steps so v7x can shard over both TCs.
    multi = [d for d in cands if n_items // d >= min_steps]
    return max(multi) if multi else max(cands)


def _launch(x_slab, w_big, r_big, bias_rows, *, n_cheb, out_dtype,
            single_buffer_consts, vmem_limit_bytes):
    n_steps, rows, lane = x_slab.shape
    const_kw = {}
    if single_buffer_consts and hasattr(pl, "Buffered"):
        # Grid-invariant operands: fetch once, don't double-buffer.
        const_kw = dict(pipeline_mode=pl.Buffered(1))
    return pl.pallas_call(
        functools.partial(_sconv_kernel, n_cheb=n_cheb),
        out_shape=jax.ShapeDtypeStruct((n_steps, rows, lane), out_dtype),
        grid=(n_steps,),
        in_specs=[
            pl.BlockSpec((None, rows, lane), lambda g: (g, 0, 0)),          # x slab
            pl.BlockSpec((n_cheb, rows, rows), lambda g: (0, 0, 0), **const_kw),  # kron(I_G, W_k)
            pl.BlockSpec((n_cheb, lane, lane), lambda g: (0, 0, 0), **const_kw),  # node-mix R_k
            pl.BlockSpec((rows, lane), lambda g: (0, 0), **const_kw),             # lane-dense bias
        ],
        out_specs=pl.BlockSpec((None, rows, lane), lambda g: (g, 0, 0)),
        compiler_params=pltpu.CompilerParams(
            dimension_semantics=("parallel",),        # shard grid steps over v7x's 2 TCs
            vmem_limit_bytes=vmem_limit_bytes),
    )(x_slab, w_big, r_big, bias_rows)


def spatio_conv_pallas(x, Lk, theta, b, *, matmul_dtype=None, node_mix="auto",
                       target_rows=256, min_steps=2, single_buffer_consts=True):
    """Forward of STGCN spatio_conv_layer.

    x: (B, C, T, N); Lk: (K, N, N); theta: (C_in, C_out, K); b: (1, C, 1, 1).
    Returns relu(einsum('iok,bitkn->botn', theta,
                        einsum('knm,bitm->bitkn', Lk, x)) + b + x).
    """
    B, C, T, N = x.shape
    K = Lk.shape[0]
    TN = T * N
    out_dtype = x.dtype
    mat_dtype = np.dtype(matmul_dtype) if matmul_dtype is not None else np.dtype(x.dtype)
    isz = mat_dtype.itemsize

    # ---- plain-JAX parameter / layout prep (wrapper glue) --------------------
    w = jnp.transpose(theta, (2, 1, 0)).astype(mat_dtype)   # (K,Cout,Cin): w[k,o,i]=theta[i,o,k]
    lkt = jnp.transpose(Lk, (0, 2, 1)).astype(mat_dtype)    # (K,N,N):      lkt[k,m,n]=Lk[k,n,m]
    bias_c = b.reshape(C).astype(jnp.float32)

    if node_mix == "auto":
        # kron(I_T, Lk^T) keeps everything lane-dense but costs K*(T*N)^2 bytes
        # of resident VMEM and inflates node-mix MACs by T; only use it while it
        # comfortably fits (headroom vs v7x's 64 MiB VMEM / scoped defaults).
        node_mix = "kron_time" if (TN <= 2048 and K * TN * TN * isz <= (24 << 20)) else "per_node"
    if node_mix not in ("kron_time", "per_node"):
        raise ValueError(f"unknown node_mix={node_mix!r}")

    if node_mix == "kron_time":
        # Layout A: rows = (batch group, C), lanes = T*N (lane-dense).
        n_items, lane = B, TN
        x_rows = x.reshape(B * C, TN)
        eye_t = jnp.eye(T, dtype=mat_dtype)
        r_big = jnp.einsum('st,kmn->ksmtn', eye_t, lkt).reshape(K, TN, TN)
    else:
        # Layout B: rows = ((batch, time) group, C), lanes = N.  Only Lk^T stays
        # resident; node mix is a plain (..., N) @ (N, N).
        n_items, lane = B * T, N
        x_rows = jnp.transpose(x, (0, 2, 1, 3)).reshape(B * T * C, N)
        r_big = lkt

    g = _pick_group(n_items, C, lane=lane, itemsize=isz,
                    target_rows=target_rows, min_steps=min_steps)
    rows = g * C
    n_steps = n_items // g

    x_slab = x_rows.astype(mat_dtype).reshape(n_steps, rows, lane)
    # Channel-mix weights packed for the whole row slab: kron(I_g, W_k).
    # TODO(synk): when C << rows this block-diagonal LHS wastes g x channel-mix
    # MACs; a grouped dot_general would avoid it but lowers poorly today.
    eye_g = jnp.eye(g, dtype=mat_dtype)
    w_big = jnp.einsum('gh,koi->kgohi', eye_g, w).reshape(K, rows, rows)
    # Lane-dense f32 bias, pre-tiled to the packed row layout (unmasked loads).
    bias_rows = jnp.tile(bias_c[:, None], (g, lane))

    out_isz = np.dtype(out_dtype).itemsize
    block_bytes = rows * lane * 2 * (isz + out_isz)                 # double-buffered in + out
    const_bytes = 2 * (w_big.size * isz + r_big.size * isz + bias_rows.size * 4)
    vmem_limit = int(min(110 << 20, max(32 << 20, 2 * (block_bytes + const_bytes))))

    run = functools.partial(_launch, x_slab, w_big, r_big, bias_rows,
                            n_cheb=K, out_dtype=out_dtype,
                            vmem_limit_bytes=vmem_limit)
    if single_buffer_consts:
        try:
            out = run(single_buffer_consts=True)
        except Exception:
            # pipeline_mode / pl.Buffered(1) unsupported here -> default buffering.
            out = run(single_buffer_consts=False)
    else:
        out = run(single_buffer_consts=False)

    if node_mix == "kron_time":
        return out.reshape(B, C, T, N)
    return jnp.transpose(out.reshape(B, T, C, N), (0, 2, 1, 3))


def spatio_conv_ref(x, Lk, theta, b):
    """Pure-JAX reference mirroring the PyTorch forward exactly."""
    x_c = jnp.einsum('knm,bitm->bitkn', Lk, x)
    x_gc = jnp.einsum('iok,bitkn->botn', theta, x_c) + b
    return jax.nn.relu(x_gc + x)


if __name__ == "__main__":
    B, C, T, N, K = 2, 4, 8, 16, 3

    key = jax.random.PRNGKey(0)
    k_x, k_l, k_t, k_b = jax.random.split(key, 4)
    x = jax.random.normal(k_x, (B, C, T, N), dtype=jnp.float32)
    Lk = 0.3 * jax.random.normal(k_l, (K, N, N), dtype=jnp.float32)
    theta = 0.3 * jax.random.normal(k_t, (C, C, K), dtype=jnp.float32)
    b = 0.1 * jax.random.normal(k_b, (1, C, 1, 1), dtype=jnp.float32)

    y_ref = spatio_conv_ref(x, Lk, theta, b)

    # 1) Default path: small graph -> lane-dense kron(I_T, Lk^T) node mix, f32.
    y = jax.block_until_ready(spatio_conv_pallas(x, Lk, theta, b))
    assert y.shape == (B, C, T, N), y.shape
    err = float(jnp.max(jnp.abs(y - y_ref)))
    assert jnp.allclose(y, y_ref, rtol=1e-4, atol=1e-4), err

    # 2) Large-graph path ((..., N) @ (N, N) node mix), forced here for coverage.
    y2 = jax.block_until_ready(
        spatio_conv_pallas(x, Lk, theta, b, node_mix="per_node"))
    err2 = float(jnp.max(jnp.abs(y2 - y_ref)))
    assert jnp.allclose(y2, y_ref, rtol=1e-4, atol=1e-4), err2

    # 3) bf16 MXU operands (v6e/v7x fast path); accumulation / elementwise in f32.
    y3 = jax.block_until_ready(
        spatio_conv_pallas(x, Lk, theta, b, matmul_dtype=jnp.bfloat16))
    err3 = float(jnp.max(jnp.abs(y3 - y_ref)))
    assert jnp.allclose(y3, y_ref, rtol=5e-2, atol=1e-1), err3

    print("KERNEL_OK")
</pallas_src>

<mosaic_0001>
module attributes {stable_mosaic.version = 11 : i64} {
  func.func @_sconv_kernel(%arg0: i32, %arg1: memref<1x4x128xf32, #tpu.memory_space<vmem>>, %arg2: memref<3x4x4xf32, #tpu.memory_space<vmem>>, %arg3: memref<3x128x128xf32, #tpu.memory_space<vmem>>, %arg4: memref<4x128xf32, #tpu.memory_space<vmem>>, %arg5: memref<1x4x128xf32, #tpu.memory_space<vmem>>) attributes {dimension_semantics = [#tpu.dimension_semantics<parallel>], iteration_bounds = array<i64: 2>, scalar_prefetch = 0 : i64, scratch_operands = 0 : i64, tpu.core_type = #tpu.core_type<tc>, window_params = [{transform_indices = @transform_0, window_bounds = array<i64: 1, 4, 128>}, {pipeline_mode = #tpu.pipeline_mode<synchronous>, transform_indices = @transform_1, window_bounds = array<i64: 3, 4, 4>}, {pipeline_mode = #tpu.pipeline_mode<synchronous>, transform_indices = @transform_2, window_bounds = array<i64: 3, 128, 128>}, {pipeline_mode = #tpu.pipeline_mode<synchronous>, transform_indices = @transform_3, window_bounds = array<i64: 4, 128>}, {transform_indices = @transform_4, window_bounds = array<i64: 1, 4, 128>}]} {
    %c0 = arith.constant 0 : index
    %c0_0 = arith.constant 0 : index
    %c0_1 = arith.constant 0 : index
    %0 = vector.load %arg1[%c0, %c0_0, %c0_1] : memref<1x4x128xf32, #tpu.memory_space<vmem>>, vector<1x4x128xf32>
    %1 = vector.shape_cast %0 : vector<1x4x128xf32> to vector<4x128xf32>
    %c0_2 = arith.constant 0 : index
    %c0_3 = arith.constant 0 : index
    %2 = vector.load %arg4[%c0_2, %c0_3] : memref<4x128xf32, #tpu.memory_space<vmem>>, vector<4x128xf32>
    %3 = arith.addf %1, %2 : vector<4x128xf32>
    %c0_4 = arith.constant 0 : index
    %c0_5 = arith.constant 0 : index
    %c0_6 = arith.constant 0 : index
    %4 = vector.load %arg2[%c0_4, %c0_5, %c0_6] : memref<3x4x4xf32, #tpu.memory_space<vmem>>, vector<1x4x4xf32>
    %5 = vector.shape_cast %4 : vector<1x4x4xf32> to vector<4x4xf32>
    %cst = arith.constant dense<0.000000e+00> : vector<4x128xf32>
    %6 = tpu.matmul %5, %1, %cst {dimension_numbers = #tpu.dot_dimension_numbers<[1], [0], [0], [1], [0, 0, 1, 1], [], []>} : vector<4x4xf32>, vector<4x128xf32>, vector<4x128xf32> -> vector<4x128xf32>
    %c0_7 = arith.constant 0 : index
    %c0_8 = arith.constant 0 : index
    %c0_9 = arith.constant 0 : index
    %7 = vector.load %arg3[%c0_7, %c0_8, %c0_9] : memref<3x128x128xf32, #tpu.memory_space<vmem>>, vector<1x128x128xf32>
    %8 = vector.shape_cast %7 : vector<1x128x128xf32> to vector<128x128xf32>
    %cst_10 = arith.constant dense<0.000000e+00> : vector<4x128xf32>
    %9 = tpu.matmul %6, %8, %cst_10 {dimension_numbers = #tpu.dot_dimension_numbers<[1], [0], [0], [1], [0, 0, 1, 1], [], []>} : vector<4x128xf32>, vector<128x128xf32>, vector<4x128xf32> -> vector<4x128xf32>
    %10 = arith.addf %3, %9 : vector<4x128xf32>
    %c1 = arith.constant 1 : index
    %c0_11 = arith.constant 0 : index
    %c0_12 = arith.constant 0 : index
    %11 = vector.load %arg2[%c1, %c0_11, %c0_12] : memref<3x4x4xf32, #tpu.memory_space<vmem>>, vector<1x4x4xf32>
    %12 = vector.shape_cast %11 : vector<1x4x4xf32> to vector<4x4xf32>
    %cst_13 = arith.constant dense<0.000000e+00> : vector<4x128xf32>
    %13 = tpu.matmul %12, %1, %cst_13 {dimension_numbers = #tpu.dot_dimension_numbers<[1], [0], [0], [1], [0, 0, 1, 1], [], []>} : vector<4x4xf32>, vector<4x128xf32>, vector<4x128xf32> -> vector<4x128xf32>
    %c1_14 = arith.constant 1 : index
    %c0_15 = arith.constant 0 : index
    %c0_16 = arith.constant 0 : index
    %14 = vector.load %arg3[%c1_14, %c0_15, %c0_16] : memref<3x128x128xf32, #tpu.memory_space<vmem>>, vector<1x128x128xf32>
    %15 = vector.shape_cast %14 : vector<1x128x128xf32> to vector<128x128xf32>
    %cst_17 = arith.constant dense<0.000000e+00> : vector<4x128xf32>
    %16 = tpu.matmul %13, %15, %cst_17 {dimension_numbers = #tpu.dot_dimension_numbers<[1], [0], [0], [1], [0, 0, 1, 1], [], []>} : vector<4x128xf32>, vector<128x128xf32>, vector<4x128xf32> -> vector<4x128xf32>
    %17 = arith.addf %10, %16 : vector<4x128xf32>
    %c2 = arith.constant 2 : index
    %c0_18 = arith.constant 0 : index
    %c0_19 = arith.constant 0 : index
    %18 = vector.load %arg2[%c2, %c0_18, %c0_19] : memref<3x4x4xf32, #tpu.memory_space<vmem>>, vector<1x4x4xf32>
    %19 = vector.shape_cast %18 : vector<1x4x4xf32> to vector<4x4xf32>
    %cst_20 = arith.constant dense<0.000000e+00> : vector<4x128xf32>
    %20 = tpu.matmul %19, %1, %cst_20 {dimension_numbers = #tpu.dot_dimension_numbers<[1], [0], [0], [1], [0, 0, 1, 1], [], []>} : vector<4x4xf32>, vector<4x128xf32>, vector<4x128xf32> -> vector<4x128xf32>
    %c2_21 = arith.constant 2 : index
    %c0_22 = arith.constant 0 : index
    %c0_23 = arith.constant 0 : index
    %21 = vector.load %arg3[%c2_21, %c0_22, %c0_23] : memref<3x128x128xf32, #tpu.memory_space<vmem>>, vector<1x128x128xf32>
    %22 = vector.shape_cast %21 : vector<1x128x128xf32> to vector<128x128xf32>
    %cst_24 = arith.constant dense<0.000000e+00> : vector<4x128xf32>
    %23 = tpu.matmul %20, %22, %cst_24 {dimension_numbers = #tpu.dot_dimension_numbers<[1], [0], [0], [1], [0, 0, 1, 1], [], []>} : vector<4x128xf32>, vector<128x128xf32>, vector<4x128xf32> -> vector<4x128xf32>
    %24 = arith.addf %17, %23 : vector<4x128xf32>
    %cst_25 = arith.constant 0.000000e+00 : f32
    %25 = vector.broadcast %cst_25 : f32 to vector<4x128xf32>
    %26 = arith.maximumf %24, %25 : vector<4x128xf32>
    %c0_26 = arith.constant 0 : index
    %c0_27 = arith.constant 0 : index
    %c0_28 = arith.constant 0 : index
    %27 = vector.load %arg5[%c0_26, %c0_27, %c0_28] : memref<1x4x128xf32, #tpu.memory_space<vmem>>, vector<1x4x128xf32>
    %28 = vector.shape_cast %27 : vector<1x4x128xf32> to vector<4x128xf32>
    %29 = vector.shape_cast %26 : vector<4x128xf32> to vector<1x4x128xf32>
    tpu.vector_store %arg5[%c0_26, %c0_27, %c0_28], %29 {strides = array<i32>} : memref<1x4x128xf32, #tpu.memory_space<vmem>>, vector<1x4x128xf32>,
    return
  }
  func.func @transform_0(%arg0: i32) -> (i32, i32, i32) {
    %c0_i32 = arith.constant 0 : i32
    %c0_i32_0 = arith.constant 0 : i32
    %c0_i32_1 = arith.constant 0 : i32
    return %arg0, %c0_i32, %c0_i32_0 : i32, i32, i32
  }
  func.func @transform_1(%arg0: i32) -> (i32, i32, i32) {
    %c0_i32 = arith.constant 0 : i32
    %c0_i32_0 = arith.constant 0 : i32
    %c0_i32_1 = arith.constant 0 : i32
    %c0_i32_2 = arith.constant 0 : i32
    return %c0_i32, %c0_i32_0, %c0_i32_1 : i32, i32, i32
  }
  func.func @transform_2(%arg0: i32) -> (i32, i32, i32) {
    %c0_i32 = arith.constant 0 : i32
    %c0_i32_0 = arith.constant 0 : i32
    %c0_i32_1 = arith.constant 0 : i32
    %c0_i32_2 = arith.constant 0 : i32
    return %c0_i32, %c0_i32_0, %c0_i32_1 : i32, i32, i32
  }
  func.func @transform_3(%arg0: i32) -> (i32, i32) {
    %c0_i32 = arith.constant 0 : i32
    %c0_i32_0 = arith.constant 0 : i32
    %c0_i32_1 = arith.constant 0 : i32
    return %c0_i32, %c0_i32_0 : i32, i32
  }
  func.func @transform_4(%arg0: i32) -> (i32, i32, i32) {
    %c0_i32 = arith.constant 0 : i32
    %c0_i32_0 = arith.constant 0 : i32
    %c0_i32_1 = arith.constant 0 : i32
    return %arg0, %c0_i32, %c0_i32_0 : i32, i32, i32
  }
}

module attributes {stable_mosaic.version = 11 : i64} {
  func.func @_sconv_kernel(%arg0: i32, %arg1: memref<1x4x128xf32, #tpu.memory_space<vmem>>, %arg2: memref<3x4x4xf32, #tpu.memory_space<vmem>>, %arg3: memref<3x128x128xf32, #tpu.memory_space<vmem>>, %arg4: memref<4x128xf32, #tpu.memory_space<vmem>>, %arg5: memref<1x4x128xf32, #tpu.memory_space<vmem>>) attributes {dimension_semantics = [#tpu.dimension_semantics<parallel>], iteration_bounds = array<i64: 2>, scalar_prefetch = 0 : i64, scratch_operands = 0 : i64, tpu.core_type = #tpu.core_type<tc>, window_params = [{transform_indices = @transform_0, window_bounds = array<i64: 1, 4, 128>}, {pipeline_mode = #tpu.pipeline_mode<synchronous>, transform_indices = @transform_1, window_bounds = array<i64: 3, 4, 4>}, {pipeline_mode = #tpu.pipeline_mode<synchronous>, transform_indices = @transform_2, window_bounds = array<i64: 3, 128, 128>}, {pipeline_mode = #tpu.pipeline_mode<synchronous>, transform_indices = @transform_3, window_bounds = array<i64: 4, 128>}, {transform_indices = @transform_4, window_bounds = array<i64: 1, 4, 128>}]} {
    %c0 = arith.constant 0 : index
    %c0_0 = arith.constant 0 : index
    %c0_1 = arith.constant 0 : index
    %0 = vector.load %arg1[%c0, %c0_0, %c0_1] : memref<1x4x128xf32, #tpu.memory_space<vmem>>, vector<1x4x128xf32>
    %1 = vector.shape_cast %0 : vector<1x4x128xf32> to vector<4x128xf32>
    %c0_2 = arith.constant 0 : index
    %c0_3 = arith.constant 0 : index
    %2 = vector.load %arg4[%c0_2, %c0_3] : memref<4x128xf32, #tpu.memory_space<vmem>>, vector<4x128xf32>
    %3 = arith.addf %1, %2 : vector<4x128xf32>
    %c0_4 = arith.constant 0 : index
    %c0_5 = arith.constant 0 : index
    %c0_6 = arith.constant 0 : index
    %4 = vector.load %arg2[%c0_4, %c0_5, %c0_6] : memref<3x4x4xf32, #tpu.memory_space<vmem>>, vector<1x4x4xf32>
    %5 = vector.shape_cast %4 : vector<1x4x4xf32> to vector<4x4xf32>
    %cst = arith.constant dense<0.000000e+00> : vector<4x128xf32>
    %6 = tpu.matmul %5, %1, %cst {dimension_numbers = #tpu.dot_dimension_numbers<[1], [0], [0], [1], [0, 0, 1, 1], [], []>} : vector<4x4xf32>, vector<4x128xf32>, vector<4x128xf32> -> vector<4x128xf32>
    %c0_7 = arith.constant 0 : index
    %c0_8 = arith.constant 0 : index
    %c0_9 = arith.constant 0 : index
    %7 = vector.load %arg3[%c0_7, %c0_8, %c0_9] : memref<3x128x128xf32, #tpu.memory_space<vmem>>, vector<1x128x128xf32>
    %8 = vector.shape_cast %7 : vector<1x128x128xf32> to vector<128x128xf32>
    %cst_10 = arith.constant dense<0.000000e+00> : vector<4x128xf32>
    %9 = tpu.matmul %6, %8, %cst_10 {dimension_numbers = #tpu.dot_dimension_numbers<[1], [0], [0], [1], [0, 0, 1, 1], [], []>} : vector<4x128xf32>, vector<128x128xf32>, vector<4x128xf32> -> vector<4x128xf32>
    %10 = arith.addf %3, %9 : vector<4x128xf32>
    %c1 = arith.constant 1 : index
    %c0_11 = arith.constant 0 : index
    %c0_12 = arith.constant 0 : index
    %11 = vector.load %arg2[%c1, %c0_11, %c0_12] : memref<3x4x4xf32, #tpu.memory_space<vmem>>, vector<1x4x4xf32>
    %12 = vector.shape_cast %11 : vector<1x4x4xf32> to vector<4x4xf32>
    %cst_13 = arith.constant dense<0.000000e+00> : vector<4x128xf32>
    %13 = tpu.matmul %12, %1, %cst_13 {dimension_numbers = #tpu.dot_dimension_numbers<[1], [0], [0], [1], [0, 0, 1, 1], [], []>} : vector<4x4xf32>, vector<4x128xf32>, vector<4x128xf32> -> vector<4x128xf32>
    %c1_14 = arith.constant 1 : index
    %c0_15 = arith.constant 0 : index
    %c0_16 = arith.constant 0 : index
    %14 = vector.load %arg3[%c1_14, %c0_15, %c0_16] : memref<3x128x128xf32, #tpu.memory_space<vmem>>, vector<1x128x128xf32>
    %15 = vector.shape_cast %14 : vector<1x128x128xf32> to vector<128x128xf32>
    %cst_17 = arith.constant dense<0.000000e+00> : vector<4x128xf32>
    %16 = tpu.matmul %13, %15, %cst_17 {dimension_numbers = #tpu.dot_dimension_numbers<[1], [0], [0], [1], [0, 0, 1, 1], [], []>} : vector<4x128xf32>, vector<128x128xf32>, vector<4x128xf32> -> vector<4x128xf32>
    %17 = arith.addf %10, %16 : vector<4x128xf32>
    %c2 = arith.constant 2 : index
    %c0_18 = arith.constant 0 : index
    %c0_19 = arith.constant 0 : index
    %18 = vector.load %arg2[%c2, %c0_18, %c0_19] : memref<3x4x4xf32, #tpu.memory_space<vmem>>, vector<1x4x4xf32>
    %19 = vector.shape_cast %18 : vector<1x4x4xf32> to vector<4x4xf32>
    %cst_20 = arith.constant dense<0.000000e+00> : vector<4x128xf32>
    %20 = tpu.matmul %19, %1, %cst_20 {dimension_numbers = #tpu.dot_dimension_numbers<[1], [0], [0], [1], [0, 0, 1, 1], [], []>} : vector<4x4xf32>, vector<4x128xf32>, vector<4x128xf32> -> vector<4x128xf32>
    %c2_21 = arith.constant 2 : index
    %c0_22 = arith.constant 0 : index
    %c0_23 = arith.constant 0 : index
    %21 = vector.load %arg3[%c2_21, %c0_22, %c0_23] : memref<3x128x128xf32, #tpu.memory_space<vmem>>, vector<1x128x128xf32>
    %22 = vector.shape_cast %21 : vector<1x128x128xf32> to vector<128x128xf32>
    %cst_24 = arith.constant dense<0.000000e+00> : vector<4x128xf32>
    %23 = tpu.matmul %20, %22, %cst_24 {dimension_numbers = #tpu.dot_dimension_numbers<[1], [0], [0], [1], [0, 0, 1, 1], [], []>} : vector<4x128xf32>, vector<128x128xf32>, vector<4x128xf32> -> vector<4x128xf32>
    %24 = arith.addf %17, %23 : vector<4x128xf32>
    %cst_25 = arith.constant 0.000000e+00 : f32
    %25 = vector.broadcast %cst_25 : f32 to vector<4x128xf32>
    %26 = arith.maximumf %24, %25 : vector<4x128xf32>
    %c0_26 = arith.constant 0 : index
    %c0_27 = arith.constant 0 : index
    %c0_28 = arith.constant 0 : index
    %27 = vector.load %arg5[%c0_26, %c0_27, %c0_28] : memref<1x4x128xf32, #tpu.memory_space<vmem>>, vector<1x4x128xf32>
    %28 = vector.shape_cast %27 : vector<1x4x128xf32> to vector<4x128xf32>
    %29 = vector.shape_cast %26 : vector<4x128xf32> to vector<1x4x128xf32>
    tpu.vector_store %arg5[%c0_26, %c0_27, %c0_28], %29 {strides = array<i32>} : memref<1x4x128xf32, #tpu.memory_space<vmem>>, vector<1x4x128xf32>,
    return
  }
  func.func @transform_0(%arg0: i32) -> (i32, i32, i32) {
    %c0_i32 = arith.constant 0 : i32
    %c0_i32_0 = arith.constant 0 : i32
    %c0_i32_1 = arith.constant 0 : i32
    return %arg0, %c0_i32, %c0_i32_0 : i32, i32, i32
  }
  func.func @transform_1(%arg0: i32) -> (i32, i32, i32) {
    %c0_i32 = arith.constant 0 : i32
    %c0_i32_0 = arith.constant 0 : i32
    %c0_i32_1 = arith.constant 0 : i32
    %c0_i32_2 = arith.constant 0 : i32
    return %c0_i32, %c0_i32_0, %c0_i32_1 : i32, i32, i32
  }
  func.func @transform_2(%arg0: i32) -> (i32, i32, i32) {
    %c0_i32 = arith.constant 0 : i32
    %c0_i32_0 = arith.constant 0 : i32
    %c0_i32_1 = arith.constant 0 : i32
    %c0_i32_2 = arith.constant 0 : i32
    return %c0_i32, %c0_i32_0, %c0_i32_1 : i32, i32, i32
  }
  func.func @transform_3(%arg0: i32) -> (i32, i32) {
    %c0_i32 = arith.constant 0 : i32
    %c0_i32_0 = arith.constant 0 : i32
    %c0_i32_1 = arith.constant 0 : i32
    return %c0_i32, %c0_i32_0 : i32, i32
  }
  func.func @transform_4(%arg0: i32) -> (i32, i32, i32) {
    %c0_i32 = arith.constant 0 : i32
    %c0_i32_0 = arith.constant 0 : i32
    %c0_i32_1 = arith.constant 0 : i32
    return %arg0, %c0_i32, %c0_i32_0 : i32, i32, i32
  }
}

</mosaic_0001>

<bundles_post_ra>
// kernel: tpu_custom_call.1
= control target key start
LH: loop header
LB: loop body
LE: loop exit
PB: predicated region body
PF: predicated region fallthrough
CT: control target
= control target key end

     0   :  { %9 = vsyncpa [#allocation3], 0  ;;  %s1546_s0 = inlined_call_operand.hbm [shape: f32[2,4,128], index: 0, kind: input, shape index: {}]   ;;  %s1547_s1 = inlined_call_operand.hbm [shape: f32[3,4,4], index: 1, kind: input, shape index: {}]   ;;  %s1548_s2 = inlined_call_operand.hbm [shape: f32[3,128,128], index: 2, kind: input, shape index: {}]   ;;  %s1549_s3 = inlined_call_operand.vmem [shape: f32[4,128], index: 3, kind: input, shape index: {}]   ;;  %s1550_s4 = inlined_call_operand.hbm [shape: f32[2,4,128], index: 4, kind: output, shape index: {}]  }
   0x1   :  { %11 = vsyncpa [#allocation3 + $0x1], 0 }
   0x2   :  { %12 = vsyncpa [#allocation6], 0 }
   0x3   :  { %13 = vsyncpa [#allocation4], 0 }
   0x4   :  { %15 = vsyncpa [#allocation4 + $0x1], 0  ;;  %s1299_s15 = smov 0   ;;  %s1301_s16 = smov 0  }
   0x5   :  { %s1303_s17 = smov 0   ;;  %s1305_s18 = smov 0  }
   0x6 LB: > { %s1320_s19 = sadd.s32 4294967295, %s1262_s18   ;;  %s842_s20 = sadd.s32 4294967294, %s1262_s18   ;;  %s1262_s18 = sphi %s1305_s18, %s1572_s18   ;;  %s1258_s17 = sphi %s1303_s17, %s1571_s17   ;;  %s1254_s16 = sphi %s1301_s16, %s1570_s16   ;;  %s1250_s15 = sphi %s1299_s15, %s1569_s15  }
   0x7   : > { %p41_p0 = scmp.ne.s32.totalorder %s1254_s16, %s1250_s15  ;;  %p1551_p1 = scmp.eq.s32.totalorder %s1320_s19, 0 }
   0x8   : > { %p134_p3 = scmp.eq.s32.totalorder %s842_s20, 1  ;;  %p843_p5 = scmp.ge.s32.totalorder %s1262_s18, 1 }
   0x9   : > { %p1329_p4 = por %p1551_p1, %p41_p0  ;;  %p141_p7 = scmp.lt.s32.totalorder %s1262_s18, 3 }
   0xa   : > { %p1334_p6 = por %p134_p3, %p41_p0  ;;  %s1264_s24 = smov [#allocation5]  }
   0xb   : > { %s1555_s21 = scalar_select %p1329_p4, 1, 0 }
   0xc   : > { %s1556_s22 = scalar_select %p1334_p6, 1, 0 }
   0xd   : > { %p1339_p8 = pnand %p843_p5, %p141_p7  ;;  %s153_s25 = sshll.u32 %s1264_s24, 4  ;;  %s154_s25 = int_to_ptr.vmem [resolvable:$true] %s153_s25 }
   0xe   : > { %s1265_s27 = smov [#allocation7]   ;;  %s1125_s29 = scalar_lea.vmem %s154_s25, 192 }
   0xf   : > { %s1557_s23 = scalar_select %p1339_p8, 1, 0 }
  0x10   : > { %p1053_p9 = pneg %p1339_p8  ;;  %s166_s28 = sshll.u32 %s1265_s27, 4  ;;  %s167_s28 = int_to_ptr.vmem [resolvable:$true] %s166_s28 }
  0x11   : > { %p1126_p13 = scmp.ne.s32.totalorder %s154_s25, %s1125_s29  ;;  %p1133_p5 = scmp.lt.s32.totalorder %s154_s25, %s154_s25 }
  0x12   : > { %p1348_p11 = pnand %p1053_p9, %p1551_p1  ;;  %p1134_p7 = scmp.lt.s32.totalorder %s1125_s29, %s1125_s29 }
  0x14   : > { %p1116_p12 = pneg %p1348_p11  ;;  %p1135_p10 = por %p1134_p7, %p1133_p5 }
  0x16   : > { %p1128_p0 = pnand %p1126_p13, %p1116_p12 }
  0x18   : > { %p1129_p3 = pneg %p1128_p0 }
  0x1a   : > { %p1136_p9 = pnand %p1135_p10, %p1129_p3 }
  0x1c   : > { %1139 = shalt.err (!%p1136_p9)
}
  0x1d   : > { %s1266_s30 = smov 64   ;;  %s1267_s5 = smov 4  }
  0x1e   : > { %1056 = dma.hbm_to_vmem [thread:$0]  (!%p1348_p11), %s1547_s1, 192, %s154_s25, [#allocation6], %s1266_s30, %s1266_s30, %s1267_s5  }
  0x1f   : > { %s1151_s8 = scalar_lea.vmem %s167_s28, 6144  ;;  %p1159_p2 = scmp.lt.s32.totalorder %s167_s28, %s167_s28 }
  0x20   : > { %p1152_p1 = scmp.ne.s32.totalorder %s167_s28, %s1151_s8  ;;  %p1160_p6 = scmp.lt.s32.totalorder %s1151_s8, %s1151_s8 }
  0x22   : > { %p1154_p13 = pnand %p1152_p1, %p1116_p12  ;;  %p1161_p5 = por %p1160_p6, %p1159_p2 }
  0x24   : > { %p1155_p0 = pneg %p1154_p13 }
  0x26   : > { %p1162_p10 = pnand %p1161_p5, %p1155_p0 }
  0x28   : > { %1165 = shalt.err (!%p1162_p10)
}
  0x29   : > { %s1268_s9 = smov 128   ;;  %s1269_s10 = smov 8  }
  0x2a   : > { %1059 = dma.hbm_to_vmem [thread:$0]  (!%p1348_p11), %s1548_s2, 6144, %s167_s28, [#allocation6], %s1268_s9, %s1268_s9, %s1269_s10  }
  0x2b   : > { %s1371_s13 = sadd.s32 1, %s1262_s18   ;;  %s28_s20 = sadd.s32 1, %s1258_s17 }
  0x2c   : > { %s25_s14 = ssub.s32 %s1262_s18, %s1371_s13  ;;  %p35_p2 = scmp.ne.s32.totalorder %s1258_s17, %s1254_s16 }
  0x2d   : > { %p26_p1 = scmp.eq.s32.totalorder %s25_s14, 0  ;;  %p36_p6 = scmp.eq.s32.totalorder %s1262_s18, 0 }
  0x2e   : > { %p1559_p3 = scmp.eq.s32.totalorder %s1320_s19, 1  ;;  %p1070_p9 = scmp.lt.s32.totalorder %s1262_s18, 2 }
  0x2f   : > { %s1380_s24 = scalar_select %p26_p1, %s1258_s17, %s28_s20  }
  0x30   : > { %p37_p12 = por %p36_p6, %p35_p2  ;;  %p1384_p7 = por %p1559_p3, %p35_p2 }
  0x31   : > { %s183_s26 = sand.u32 1, %s1258_s17   ;;  %s848_s28 = sshll.u32 %s1262_s18, 6 }
  0x32   : > { %s1560_s25 = scalar_select %p1384_p7, 1, 0 }
  0x33   : > { %s847_s27 = sshll.u32 %s183_s26, 2  ;;  %s1394_s5 = scalar_lea.hbm %s1546_s0, %s848_s28 }
  0x34   : > { %s187_s6 = scalar_lea.vmem [#allocation2], %s847_s27  ;;  %p1396_p11 = pnand %p1070_p9, %p37_p12 }
  0x35   : > { %s194_s7 = sshll.u32 %s187_s6, 4  ;;  %s184_s9 = scalar_lea.sflag [#allocation3], %s183_s26  ;;  %s195_s7 = int_to_ptr.vmem [resolvable:$true] %s194_s7 }
  0x36   : > { %s1166_s10 = scalar_lea.hbm %s1394_s5, 64  ;;  %p1168_p0 = pneg %p1396_p11 }
  0x37   : > { %p1167_p13 = scmp.ne.s32.totalorder %s1394_s5, %s1166_s10  ;;  %s1171_s14 = scalar_lea.hbm %s1546_s0, 128 }
  0x38   : > { %p1172_p1 = scmp.lt.s32.totalorder %s1394_s5, %s1546_s0  ;;  %p1173_p2 = scmp.lt.s32.totalorder %s1171_s14, %s1166_s10 }
  0x39   : > { %p1169_p5 = pnand %p1168_p0, %p1167_p13 }
  0x3a   : > { %p1174_p6 = por %p1173_p2, %p1172_p1 }
  0x3b   : > { %p1170_p10 = pneg %p1169_p5 }
  0x3d   : > { %p1175_p12 = pnand %p1174_p6, %p1170_p10 }
  0x3f   : > { %1178 = shalt.err (!%p1175_p12)
}
  0x40   : > { %s1179_s28 = scalar_lea.vmem %s195_s7, 64  ;;  %s1270_s26 = smov [#allocation2]  }
  0x41   : > { %p1180_p3 = scmp.ne.s32.totalorder %s195_s7, %s1179_s28  ;;  %s1184_s29 = sshll.u32 %s1270_s26, 4  ;;  %s1185_s29 = int_to_ptr.vmem [resolvable:$false] %s1184_s29 }
  0x42   : > { %s1186_s30 = scalar_lea.vmem %s1185_s29, 128  ;;  %p1187_p13 = scmp.lt.s32.totalorder %s195_s7, %s1185_s29 }
  0x43   : > { %p1182_p9 = pnand %p1180_p3, %p1168_p0  ;;  %p1188_p5 = scmp.lt.s32.totalorder %s1186_s30, %s1179_s28 }
  0x45   : > { %p1183_p7 = pneg %p1182_p9  ;;  %p1189_p4 = por %p1188_p5, %p1187_p13 }
  0x47   : > { %p1190_p8 = pnand %p1189_p4, %p1183_p7 }
  0x49   : > { %1193 = shalt.err (!%p1190_p8)
}
  0x4a   : > { %1063 = dma.hbm_to_vmem [thread:$0]  (!%p1396_p11), %s1394_s5, 64, %s195_s7, %s184_s9  }
  0x4b   : > { %p1562_p10 = scmp.ne.s32.totalorder %s1557_s23, 0 }
  0x4c   : > { %s1417_s6 = sand.u32 (!%p1562_p10), 1, %s1254_s16   ;;  %p1563_p4 = scmp.ne.s32.totalorder (!%p1562_p10), %s1555_s21, 0 }
  0x4d   : > { %203 = sbr.rel (%p1562_p10) target bundleno = 694 (0x2b6), region = 36  ;;  %s850_s10 = sshll.u32 (!%p1562_p10), %s1417_s6, 2 }
  0x4e   : > { %s206_s11 = scalar_lea.sflag (!%p1562_p10), [#allocation3], %s1417_s6  ;;  %s209_s12 = scalar_lea.vmem (!%p1562_p10), [#allocation2], %s850_s10 }
  0x52   : > { %1237 = dma.done.wait (%p1563_p4), %s206_s11, 64  }
  0x53   : > { %1239 = vsyncadd (%p1563_p4), %s206_s11, 4294967232  ;;  %p1564_p8 = scmp.eq.s32.totalorder %s1320_s19, 0 }
  0x55   : > { %1241 = dma.done.wait (%p1564_p8), [#allocation6], 6336   ;;  %p1565_p7 = pmov %p1564_p8 }
  0x56   : > { %v1271_v0 = vmov 0.0   ;;  %vm1272_vm0 = vmmov 0   ;;  %vm250_vm1 = vcmask 1043456   ;;  %vm246_vm2 = vcmask 31744   ;;  %v1437_v1 = vld [vmem:[%s209_s12] sm:$0xf] }
  0x57   : > { %1243 = vsyncadd (%p1565_p7), [#allocation6], 4294960960  ;;  %921 = vmatprep.subr.mxu0 %v1271_v0  ;;  %923 = vmatprep.mubr.msk.f32.mxu0 %vm1272_vm0, %v1271_v0  ;;  %v245_v2 = vld [vmem:[#allocation5] sm:$0xf]  ;;  %v339_v3 = vld [vmem:[#allocation7 + $0x78] sm:$0xff]  ;;  %s861_s5 = sshll.u32 %s1320_s19, 6 }
  0x58   : > { %926 = vmatprep.subr.mxu1 %v1271_v0  ;;  %958 = vmatprep.mubr.msk.f32.mxu1 %vm1272_vm0, %v1271_v0  ;;  %v412_v4 = vld [vmem:[#allocation5 + $0x4] sm:$0xf]  ;;  %v338_v5 = vld [vmem:[#allocation7 + $0x70] sm:$0xff]  ;;  %v337_v7 = vld [vmem:[#allocation7 + $0x68] sm:$0xff]  ;;  %s241_s7 = scalar_lea.vmem [#allocation8], %s850_s10  ;;  %s751_s20 = scalar_lea.hbm %s1550_s4, %s861_s5 }
  0x59   : > { %922 = vmatpush3.msk.msra.mxu0 %vm250_vm1, %v1437_v1  ;;  %927 = vmatpush3.msra.mxu1 %v339_v3  ;;  %v502_v6 = vld [vmem:[#allocation7 + $0xf8] sm:$0xff]  ;;  %v501_v8 = vld [vmem:[#allocation7 + $0xf0] sm:$0xff]  ;;  %v336_v9 = vld [vmem:[#allocation7 + $0x60] sm:$0xff]  ;;  %s753_s8 = sshll.u32 %s241_s7, 4  ;;  %s740_s27 = scalar_lea.sflag [#allocation4], %s1417_s6  ;;  %s754_s8 = int_to_ptr.vmem [resolvable:$true] %s753_s8 }
  0x5a   : > { %924 = vmatmul.mubr.msk.f32.vlgmr.msra.gmra.mxu0 %vm246_vm2, %v245_v2  ;;  %961 = vmatprep.subr.mxu0 %v1271_v0  ;;  %v500_v10 = vld [vmem:[#allocation7 + $0xe8] sm:$0xff]  ;;  %v335_v11 = vld [vmem:[#allocation7 + $0x58] sm:$0xff]  ;;  %v499_v12 = vld [vmem:[#allocation7 + $0xe0] sm:$0xff]  ;;  %s1194_s28 = scalar_lea.vmem %s754_s8, 64  ;;  %p1566_p0 = scmp.ne.s32.totalorder %s1560_s25, 0 }
  0x5b   : > { %962 = vmatpush3.msk.msra.mxu0 %vm250_vm1, %v1437_v1  ;;  %963 = vmatprep.mubr.msk.f32.mxu0 %vm1272_vm0, %v1271_v0  ;;  %v334_v13 = vld [vmem:[#allocation7 + $0x50] sm:$0xff]  ;;  %v498_v14 = vld [vmem:[#allocation7 + $0xd8] sm:$0xff]  ;;  %v333_v15 = vld [vmem:[#allocation7 + $0x48] sm:$0xff]  ;;  %p1195_p11 = scmp.ne.s32.totalorder %s754_s8, %s1194_s28  ;;  %s1273_s26 = smov [#allocation8]  }
  0x5c   : > { %966 = vmatprep.subr.mxu0 %v1271_v0  ;;  %928 = vmatprep.subr.mxu1 %v1271_v0  ;;  %v497_v16 = vld [vmem:[#allocation7 + $0xd0] sm:$0xff]  ;;  %v332_v17 = vld [vmem:[#allocation7 + $0x40] sm:$0xff]  ;;  %v496_v18 = vld [vmem:[#allocation7 + $0xc8] sm:$0xff]  ;;  %s1198_s19 = sshll.u32 %s1273_s26, 4  ;;  %s1199_s19 = int_to_ptr.vmem [resolvable:$false] %s1198_s19 }
  0x5d   : > { %929 = vmatpush3.msra.mxu1 %v338_v5  ;;  %v331_v19 = vld [vmem:[#allocation7 + $0x38] sm:$0xff]  ;;  %v495_v20 = vld [vmem:[#allocation7 + $0xc0] sm:$0xff]  ;;  %v330_v21 = vld [vmem:[#allocation7 + $0x30] sm:$0xff]  ;;  %p1196_p1 = pnand %p1195_p11, %p1566_p0  ;;  %s1200_s29 = scalar_lea.vmem %s1199_s19, 128 }
  0x5e   : > { %964 = vmatmul.mubr.msk.f32.vlgmr.msra.gmra.mxu0 %vm246_vm2, %v412_v4  ;;  %930 = vmatprep.subr.mxu1 %v1271_v0  ;;  %v494_v22 = vld [vmem:[#allocation7 + $0xb8] sm:$0xff]  ;;  %v329_v23 = vld [vmem:[#allocation7 + $0x28] sm:$0xff]  ;;  %v493_v24 = vld [vmem:[#allocation7 + $0xb0] sm:$0xff]  ;;  %p1201_p6 = scmp.lt.s32.totalorder %s754_s8, %s1199_s19  ;;  %p1202_p12 = scmp.lt.s32.totalorder %s1200_s29, %s1194_s28 }
  0x5f   : > { %967 = vmatpush3.msra.mxu0 %v502_v6  ;;  %931 = vmatpush3.msra.mxu1 %v337_v7  ;;  %v328_v25 = vld [vmem:[#allocation7 + $0x20] sm:$0xff]  ;;  %v492_v26 = vld [vmem:[#allocation7 + $0xa8] sm:$0xff]  ;;  %v327_v27 = vld [vmem:[#allocation7 + $0x18] sm:$0xff]  ;;  %p1197_p2 = pneg %p1196_p1 }
  0x60   : > { %968 = vmatprep.subr.mxu0 %v1271_v0  ;;  %932 = vmatprep.subr.mxu1 %v1271_v0  ;;  %v491_v28 = vld [vmem:[#allocation7 + $0xa0] sm:$0xff]  ;;  %v326_v29 = vld [vmem:[#allocation7 + $0x10] sm:$0xff]  ;;  %v490_v30 = vld [vmem:[#allocation7 + $0x98] sm:$0xff]  ;;  %p1203_p3 = por %p1202_p12, %p1201_p6 }
  0x61   : > { %969 = vmatpush3.msra.mxu0 %v501_v8  ;;  %933 = vmatpush3.msra.mxu1 %v336_v9  ;;  %v325_v31 = vld [vmem:[#allocation7 + $0x8] sm:$0xff]  ;;  %v324_v32 = vld [vmem:[#allocation7] sm:$0xff]  ;;  %v489_v33 = vld [vmem:[#allocation7 + $0x90] sm:$0xff] }
  0x62   : > { %970 = vmatprep.subr.mxu0 %v1271_v0  ;;  %934 = vmatprep.subr.mxu1 %v1271_v0  ;;  %v488_v34 = vld [vmem:[#allocation7 + $0x88] sm:$0xff]  ;;  %v487_v35 = vld [vmem:[#allocation7 + $0x80] sm:$0xff]  ;;  %v665_v36 = vld [vmem:[#allocation7 + $0x178] sm:$0xff]  ;;  %p1204_p9 = pnand %p1203_p3, %p1197_p2 }
  0x63   : > { %971 = vmatpush3.msra.mxu0 %v500_v10  ;;  %935 = vmatpush3.msra.mxu1 %v335_v11  ;;  %v664_v38 = vld [vmem:[#allocation7 + $0x170] sm:$0xff]  ;;  %v663_v41 = vld [vmem:[#allocation7 + $0x168] sm:$0xff]  ;;  %v575_v43 = vld [vmem:[#allocation5 + $0x8] sm:$0xf] }
  0x64   : > { %972 = vmatprep.subr.mxu0 %v1271_v0  ;;  %936 = vmatprep.subr.mxu1 %v1271_v0  ;;  %v662_v44 = vld [vmem:[#allocation7 + $0x160] sm:$0xff]  ;;  %v661_v45 = vld [vmem:[#allocation7 + $0x158] sm:$0xff]  ;;  %v660_v46 = vld [vmem:[#allocation7 + $0x150] sm:$0xff] }
  0x65   : > { %973 = vmatpush3.msra.mxu0 %v499_v12  ;;  %937 = vmatpush3.msra.mxu1 %v334_v13  ;;  %v659_v47 = vld [vmem:[#allocation7 + $0x148] sm:$0xff]  ;;  %v658_v48 = vld [vmem:[#allocation7 + $0x140] sm:$0xff]  ;;  %v657_v49 = vld [vmem:[#allocation7 + $0x138] sm:$0xff] }
  0x66   : > { %974 = vmatprep.subr.mxu0 %v1271_v0  ;;  %938 = vmatprep.subr.mxu1 %v1271_v0  ;;  %v656_v50 = vld [vmem:[#allocation7 + $0x130] sm:$0xff]  ;;  %v655_v51 = vld [vmem:[#allocation7 + $0x128] sm:$0xff]  ;;  %v654_v52 = vld [vmem:[#allocation7 + $0x120] sm:$0xff] }
  0x67   : > { %975 = vmatpush3.msra.mxu0 %v498_v14  ;;  %939 = vmatpush3.msra.mxu1 %v333_v15  ;;  %v653_v53 = vld [vmem:[#allocation7 + $0x118] sm:$0xff]  ;;  %v652_v54 = vld [vmem:[#allocation7 + $0x110] sm:$0xff]  ;;  %v651_v55 = vld [vmem:[#allocation7 + $0x108] sm:$0xff] }
  0x68   : > { %976 = vmatprep.subr.mxu0 %v1271_v0  ;;  %940 = vmatprep.subr.mxu1 %v1271_v0  ;;  %v650_v56 = vld [vmem:[#allocation7 + $0x100] sm:$0xff]  ;;  %v243_v57 = vld [vmem:[%s1549_s3] sm:$0xf] }
  0x69   : > { %977 = vmatpush3.msra.mxu0 %v497_v16  ;;  %941 = vmatpush3.msra.mxu1 %v332_v17  ;;  %v244_v58 = vadd.f32 %v243_v57, %v1437_v1 }
  0x6a   : > { %978 = vmatprep.subr.mxu0 %v1271_v0  ;;  %942 = vmatprep.subr.mxu1 %v1271_v0 }
  0x6b   : > { %979 = vmatpush3.msra.mxu0 %v496_v18  ;;  %943 = vmatpush3.msra.mxu1 %v331_v19 }
  0x6c   : > { %980 = vmatprep.subr.mxu0 %v1271_v0  ;;  %944 = vmatprep.subr.mxu1 %v1271_v0 }
  0x6d   : > { %981 = vmatpush3.msra.mxu0 %v495_v20  ;;  %945 = vmatpush3.msra.mxu1 %v330_v21 }
  0x6e   : > { %982 = vmatprep.subr.mxu0 %v1271_v0  ;;  %946 = vmatprep.subr.mxu1 %v1271_v0 }
  0x6f   : > { %983 = vmatpush3.msra.mxu0 %v494_v22  ;;  %947 = vmatpush3.msra.mxu1 %v329_v23 }
  0x70   : > { %984 = vmatprep.subr.mxu0 %v1271_v0  ;;  %948 = vmatprep.subr.mxu1 %v1271_v0 }
  0x71   : > { %985 = vmatpush3.msra.mxu0 %v493_v24  ;;  %949 = vmatpush3.msra.mxu1 %v328_v25 }
  0x72   : > { %986 = vmatprep.subr.mxu0 %v1271_v0  ;;  %950 = vmatprep.subr.mxu1 %v1271_v0 }
  0x73   : > { %987 = vmatpush3.msra.mxu0 %v492_v26  ;;  %951 = vmatpush3.msra.mxu1 %v327_v27 }
  0x74   : > { %988 = vmatprep.subr.mxu0 %v1271_v0  ;;  %952 = vmatprep.subr.mxu1 %v1271_v0 }
  0x75   : > { %989 = vmatpush3.msra.mxu0 %v491_v28  ;;  %953 = vmatpush3.msra.mxu1 %v326_v29 }
  0x76   : > { %990 = vmatprep.subr.mxu0 %v1271_v0  ;;  %954 = vmatprep.subr.mxu1 %v1271_v0 }
  0x77   : > { %991 = vmatpush3.msra.mxu0 %v490_v30  ;;  %955 = vmatpush3.msra.mxu1 %v325_v31 }
  0x78   : > { %992 = vmatprep.subr.mxu0 %v1271_v0  ;;  %956 = vmatprep.subr.mxu1 %v1271_v0 }
  0x79   : > { %998 = vmatprep.mubr.msk.f32.mxu0 %vm1272_vm0, %v1271_v0  ;;  %957 = vmatpush3.msra.mxu1 %v324_v32 }
  0x7a   : > { %993 = vmatpush3.msra.mxu0 %v489_v33  ;;  %1006 = vmatprep.subr.mxu1 %v1271_v0 }
  0x7b   : > { %994 = vmatprep.subr.mxu0 %v1271_v0 }
  0x7c   : > { %995 = vmatpush3.msra.mxu0 %v488_v34 }
  0x7d   : > { %996 = vmatprep.subr.mxu0 %v1271_v0 }
  0x7e   : > { %997 = vmatpush3.msra.mxu0 %v487_v35 }
  0x7f   : > { %1001 = vmatprep.subr.mxu0 %v1271_v0 }
 0x11a   : > { %v320_v37 = vpop.f32.mrf.mxu0 }
 0x11b   : > { %959 = vmatmul.mubr.f32.vlgmr.msra.gmra.mxu1 %v320_v37 }
 0x11c   : > { %v925_v39 = vpop.f32.mrf.mxu0  ;;  %1007 = vmatpush3.msra.mxu1 %v665_v36  ;;  %1038 = vmatprep.mubr.msk.f32.mxu1 %vm1272_vm0, %v1271_v0 }
 0x11d   : > { %1008 = vmatprep.subr.mxu1 %v1271_v0 }
 0x11e   : > { %v482_v40 = vpop.f32.mrf.mxu0  ;;  %1009 = vmatpush3.msra.mxu1 %v664_v38 }
 0x11f   : > { %999 = vmatmul.mubr.f32.vlgmr.msra.gmra.mxu0 %v482_v40  ;;  %1010 = vmatprep.subr.mxu1 %v1271_v0 }
 0x120   : > { %v965_v42 = vpop.f32.mrf.mxu0  ;;  %1002 = vmatpush3.msk.msra.mxu0 %vm250_vm1, %v1437_v1  ;;  %1003 = vmatprep.mubr.msk.f32.mxu0 %vm1272_vm0, %v1271_v0 }
 0x121   : > { %1011 = vmatpush3.msra.mxu1 %v663_v41 }
 0x122   : > { %1012 = vmatprep.subr.mxu1 %v1271_v0 }
 0x123   : > { %1004 = vmatmul.mubr.msk.f32.vlgmr.msra.gmra.mxu0 %vm246_vm2, %v575_v43  ;;  %1013 = vmatpush3.msra.mxu1 %v662_v44 }
 0x124   : > { %1014 = vmatprep.subr.mxu1 %v1271_v0 }
 0x125   : > { %1015 = vmatpush3.msra.mxu1 %v661_v45 }
 0x126   : > { %1016 = vmatprep.subr.mxu1 %v1271_v0 }
 0x127   : > { %1017 = vmatpush3.msra.mxu1 %v660_v46 }
 0x128   : > { %1018 = vmatprep.subr.mxu1 %v1271_v0 }
 0x129   : > { %1019 = vmatpush3.msra.mxu1 %v659_v47 }
 0x12a   : > { %1020 = vmatprep.subr.mxu1 %v1271_v0 }
 0x12b   : > { %1021 = vmatpush3.msra.mxu1 %v658_v48 }
 0x12c   : > { %1022 = vmatprep.subr.mxu1 %v1271_v0 }
 0x12d   : > { %1023 = vmatpush3.msra.mxu1 %v657_v49 }
 0x12e   : > { %1024 = vmatprep.subr.mxu1 %v1271_v0 }
 0x12f   : > { %1025 = vmatpush3.msra.mxu1 %v656_v50 }
 0x130   : > { %1026 = vmatprep.subr.mxu1 %v1271_v0 }
 0x131   : > { %1027 = vmatpush3.msra.mxu1 %v655_v51 }
 0x132   : > { %1028 = vmatprep.subr.mxu1 %v1271_v0 }
 0x133   : > { %1029 = vmatpush3.msra.mxu1 %v654_v52 }
 0x134   : > { %1030 = vmatprep.subr.mxu1 %v1271_v0 }
 0x135   : > { %1031 = vmatpush3.msra.mxu1 %v653_v53 }
 0x136   : > { %1032 = vmatprep.subr.mxu1 %v1271_v0 }
 0x137   : > { %1033 = vmatpush3.msra.mxu1 %v652_v54 }
 0x138   : > { %1034 = vmatprep.subr.mxu1 %v1271_v0 }
 0x139   : > { %1035 = vmatpush3.msra.mxu1 %v651_v55 }
 0x13a   : > { %1036 = vmatprep.subr.mxu1 %v1271_v0 }
 0x13b   : > { %1037 = vmatpush3.msra.mxu1 %v650_v56 }
 0x1db   : > { %v406_v59 = vpop.f32.mrf.mxu1 }
 0x1dc   : > { %v410_v61 = vadd.f32 %v406_v59, %v244_v58 }
 0x1dd   : > { %v960_v60 = vpop.f32.mrf.mxu1 }
 0x1df   : > { %v569_v62 = vpop.f32.mrf.mxu0 }
 0x1e0   : > { %v573_v63 = vadd.f32 %v569_v62, %v410_v61 }
 0x1e1   : > { %v1000_v2 = vpop.f32.mrf.mxu0 }
 0x1e3   : > { %v645_v3 = vpop.f32.mrf.mxu0 }
 0x1e4   : > { %1039 = vmatmul.mubr.f32.vlgmr.msra.gmra.mxu1 %v645_v3 }
 0x1e5   : > { %v1005_v0 = vpop.f32.mrf.mxu0 }
 0x2a4   : > { %v732_v4 = vpop.f32.mrf.mxu1 }
 0x2a5   : > { %v736_v5 = vadd.f32 %v732_v4, %v573_v63 }
 0x2a6   : > { %v1040_v6 = vpop.f32.mrf.mxu1 }
 0x2a7   : > { %v737_v7 = vmax.f32 %v736_v5, 0.0 }
 0x2a9   : > { %738 = vst [vmem:[%s241_s7] sm:$0xf] %v737_v7 }
 0x2aa   : > { %1207 = shalt.err (!%p1204_p9)
}
 0x2ab   : > { %s1208_s30 = scalar_lea.hbm %s751_s20, 64  ;;  %s1212_s11 = scalar_lea.hbm %s1550_s4, 128 }
 0x2ac   : > { %p1209_p13 = scmp.ne.s32.totalorder %s751_s20, %s1208_s30  ;;  %p1213_p4 = scmp.lt.s32.totalorder %s751_s20, %s1550_s4 }
 0x2ad   : > { %p1214_p8 = scmp.lt.s32.totalorder %s1212_s11, %s1208_s30 }
 0x2ae   : > { %p1210_p5 = pnand %p1209_p13, %p1566_p0 }
 0x2af   : > { %p1215_p7 = por %p1214_p8, %p1213_p4 }
 0x2b0   : > { %p1211_p10 = pneg %p1210_p5 }
 0x2b2   : > { %p1216_p11 = pnand %p1215_p7, %p1211_p10 }
 0x2b4   : > { %1219 = shalt.err (!%p1216_p11)
}
 0x2b5   : > { %1051 = dma.vmem_to_hbm [thread:$0]  (%p1566_p0), %s754_s8, 64, %s751_s20, %s740_s27  }
 0x2b6 PF: > { %s765_s23 = sand.u32 1, %s1250_s15   ;;  %p1567_p1 = scmp.ne.s32.totalorder %s1556_s22, 0 }
 0x2b7   : > { %p1568_p2 = scmp.ge.s32.totalorder %s1262_s18, 2  ;;  %s766_s5 = scalar_lea.sflag [#allocation4], %s765_s23 }
 0x2b9   : > { %p1065_p6 = pnand %p1568_p2, %p1567_p1 }
 0x2bb   : > { %p1066_p12 = pneg %p1065_p6 }
 0x2bd   : > { %1245 = dma.done.wait (%p1066_p12), %s766_s5, 64  }
 0x2be   : > { %1247 = vsyncadd (%p1066_p12), %s766_s5, 4294967232  ;;  %p18_p3 = scmp.ge.s32.totalorder %s1371_s13, 4   ;;  %s1569_s15 = smov %s1254_s16 }
 0x2bf   : > { %s1570_s16 = smov %s1258_s17  ;;  %s1571_s17 = smov %s1380_s24 }
 0x2c0   : > { %s1572_s18 = smov %s1371_s13  ;;  %20 = sbr.rel (!%p18_p3) target bundleno = 6 (0x6), region = 93 }
 0x2c5   :  { %771 = vsyncpa [#allocation3], 1 }
 0x2c6   :  { %773 = vsyncpa [#allocation3 + $0x1], 1 }
 0x2c7   :  { %774 = vsyncpa [#allocation6], 1 }
 0x2c8   :  { %775 = vsyncpa [#allocation4], 1 }
 0x2c9   :  { %777 = vsyncpa [#allocation4 + $0x1], 1 }

// kernel: tpu_custom_call.1
= control target key start
LH: loop header
LB: loop body
LE: loop exit
PB: predicated region body
PF: predicated region fallthrough
CT: control target
= control target key end

     0   :  { %9 = vsyncpa [#allocation3], 0  ;;  %s1546_s0 = inlined_call_operand.hbm [shape: f32[2,4,128], index: 0, kind: input, shape index: {}]   ;;  %s1547_s1 = inlined_call_operand.hbm [shape: f32[3,4,4], index: 1, kind: input, shape index: {}]   ;;  %s1548_s2 = inlined_call_operand.hbm [shape: f32[3,128,128], index: 2, kind: input, shape index: {}]   ;;  %s1549_s3 = inlined_call_operand.vmem [shape: f32[4,128], index: 3, kind: input, shape index: {}]   ;;  %s1550_s4 = inlined_call_operand.hbm [shape: f32[2,4,128], index: 4, kind: output, shape index: {}]  }
   0x1   :  { %11 = vsyncpa [#allocation3 + $0x1], 0 }
   0x2   :  { %12 = vsyncpa [#allocation6], 0 }
   0x3   :  { %13 = vsyncpa [#allocation4], 0 }
   0x4   :  { %15 = vsyncpa [#allocation4 + $0x1], 0  ;;  %s1299_s15 = smov 0   ;;  %s1301_s16 = smov 0  }
   0x5   :  { %s1303_s17 = smov 0   ;;  %s1305_s18 = smov 0  }
   0x6 LB: > { %s1320_s19 = sadd.s32 4294967295, %s1262_s18   ;;  %s842_s20 = sadd.s32 4294967294, %s1262_s18   ;;  %s1262_s18 = sphi %s1305_s18, %s1572_s18   ;;  %s1258_s17 = sphi %s1303_s17, %s1571_s17   ;;  %s1254_s16 = sphi %s1301_s16, %s1570_s16   ;;  %s1250_s15 = sphi %s1299_s15, %s1569_s15  }
   0x7   : > { %p41_p0 = scmp.ne.s32.totalorder %s1254_s16, %s1250_s15  ;;  %p1551_p1 = scmp.eq.s32.totalorder %s1320_s19, 0 }
   0x8   : > { %p134_p3 = scmp.eq.s32.totalorder %s842_s20, 1  ;;  %p843_p5 = scmp.ge.s32.totalorder %s1262_s18, 1 }
   0x9   : > { %p1329_p4 = por %p1551_p1, %p41_p0  ;;  %p141_p7 = scmp.lt.s32.totalorder %s1262_s18, 3 }
   0xa   : > { %p1334_p6 = por %p134_p3, %p41_p0  ;;  %s1264_s24 = smov [#allocation5]  }
   0xb   : > { %s1555_s21 = scalar_select %p1329_p4, 1, 0 }
   0xc   : > { %s1556_s22 = scalar_select %p1334_p6, 1, 0 }
   0xd   : > { %p1339_p8 = pnand %p843_p5, %p141_p7  ;;  %s153_s25 = sshll.u32 %s1264_s24, 4  ;;  %s154_s25 = int_to_ptr.vmem [resolvable:$true] %s153_s25 }
   0xe   : > { %s1265_s27 = smov [#allocation7]   ;;  %s1125_s29 = scalar_lea.vmem %s154_s25, 192 }
   0xf   : > { %s1557_s23 = scalar_select %p1339_p8, 1, 0 }
  0x10   : > { %p1053_p9 = pneg %p1339_p8  ;;  %s166_s28 = sshll.u32 %s1265_s27, 4  ;;  %s167_s28 = int_to_ptr.vmem [resolvable:$true] %s166_s28 }
  0x11   : > { %p1126_p13 = scmp.ne.s32.totalorder %s154_s25, %s1125_s29  ;;  %p1133_p5 = scmp.lt.s32.totalorder %s154_s25, %s154_s25 }
  0x12   : > { %p1348_p11 = pnand %p1053_p9, %p1551_p1  ;;  %p1134_p7 = scmp.lt.s32.totalorder %s1125_s29, %s1125_s29 }
  0x14   : > { %p1116_p12 = pneg %p1348_p11  ;;  %p1135_p10 = por %p1134_p7, %p1133_p5 }
  0x16   : > { %p1128_p0 = pnand %p1126_p13, %p1116_p12 }
  0x18   : > { %p1129_p3 = pneg %p1128_p0 }
  0x1a   : > { %p1136_p9 = pnand %p1135_p10, %p1129_p3 }
  0x1c   : > { %1139 = shalt.err (!%p1136_p9)
}
  0x1d   : > { %s1266_s30 = smov 64   ;;  %s1267_s5 = smov 4  }
  0x1e   : > { %1056 = dma.hbm_to_vmem [thread:$0]  (!%p1348_p11), %s1547_s1, 192, %s154_s25, [#allocation6], %s1266_s30, %s1266_s30, %s1267_s5  }
  0x1f   : > { %s1151_s8 = scalar_lea.vmem %s167_s28, 6144  ;;  %p1159_p2 = scmp.lt.s32.totalorder %s167_s28, %s167_s28 }
  0x20   : > { %p1152_p1 = scmp.ne.s32.totalorder %s167_s28, %s1151_s8  ;;  %p1160_p6 = scmp.lt.s32.totalorder %s1151_s8, %s1151_s8 }
  0x22   : > { %p1154_p13 = pnand %p1152_p1, %p1116_p12  ;;  %p1161_p5 = por %p1160_p6, %p1159_p2 }
  0x24   : > { %p1155_p0 = pneg %p1154_p13 }
  0x26   : > { %p1162_p10 = pnand %p1161_p5, %p1155_p0 }
  0x28   : > { %1165 = shalt.err (!%p1162_p10)
}
  0x29   : > { %s1268_s9 = smov 128   ;;  %s1269_s10 = smov 8  }
  0x2a   : > { %1059 = dma.hbm_to_vmem [thread:$0]  (!%p1348_p11), %s1548_s2, 6144, %s167_s28, [#allocation6], %s1268_s9, %s1268_s9, %s1269_s10  }
  0x2b   : > { %s1371_s13 = sadd.s32 1, %s1262_s18   ;;  %s28_s20 = sadd.s32 1, %s1258_s17 }
  0x2c   : > { %s25_s14 = ssub.s32 %s1262_s18, %s1371_s13  ;;  %p35_p2 = scmp.ne.s32.totalorder %s1258_s17, %s1254_s16 }
  0x2d   : > { %p26_p1 = scmp.eq.s32.totalorder %s25_s14, 0  ;;  %p36_p6 = scmp.eq.s32.totalorder %s1262_s18, 0 }
  0x2e   : > { %p1559_p3 = scmp.eq.s32.totalorder %s1320_s19, 1  ;;  %p1070_p9 = scmp.lt.s32.totalorder %s1262_s18, 2 }
  0x2f   : > { %s1380_s24 = scalar_select %p26_p1, %s1258_s17, %s28_s20  }
  0x30   : > { %p37_p12 = por %p36_p6, %p35_p2  ;;  %p1384_p7 = por %p1559_p3, %p35_p2 }
  0x31   : > { %s183_s26 = sand.u32 1, %s1258_s17   ;;  %s848_s28 = sshll.u32 %s1262_s18, 6 }
  0x32   : > { %s1560_s25 = scalar_select %p1384_p7, 1, 0 }
  0x33   : > { %s847_s27 = sshll.u32 %s183_s26, 2  ;;  %s1394_s5 = scalar_lea.hbm %s1546_s0, %s848_s28 }
  0x34   : > { %s187_s6 = scalar_lea.vmem [#allocation2], %s847_s27  ;;  %p1396_p11 = pnand %p1070_p9, %p37_p12 }
  0x35   : > { %s194_s7 = sshll.u32 %s187_s6, 4  ;;  %s184_s9 = scalar_lea.sflag [#allocation3], %s183_s26  ;;  %s195_s7 = int_to_ptr.vmem [resolvable:$true] %s194_s7 }
  0x36   : > { %s1166_s10 = scalar_lea.hbm %s1394_s5, 64  ;;  %p1168_p0 = pneg %p1396_p11 }
  0x37   : > { %p1167_p13 = scmp.ne.s32.totalorder %s1394_s5, %s1166_s10  ;;  %s1171_s14 = scalar_lea.hbm %s1546_s0, 128 }
  0x38   : > { %p1172_p1 = scmp.lt.s32.totalorder %s1394_s5, %s1546_s0  ;;  %p1173_p2 = scmp.lt.s32.totalorder %s1171_s14, %s1166_s10 }
  0x39   : > { %p1169_p5 = pnand %p1168_p0, %p1167_p13 }
  0x3a   : > { %p1174_p6 = por %p1173_p2, %p1172_p1 }
  0x3b   : > { %p1170_p10 = pneg %p1169_p5 }
  0x3d   : > { %p1175_p12 = pnand %p1174_p6, %p1170_p10 }
  0x3f   : > { %1178 = shalt.err (!%p1175_p12)
}
  0x40   : > { %s1179_s28 = scalar_lea.vmem %s195_s7, 64  ;;  %s1270_s26 = smov [#allocation2]  }
  0x41   : > { %p1180_p3 = scmp.ne.s32.totalorder %s195_s7, %s1179_s28  ;;  %s1184_s29 = sshll.u32 %s1270_s26, 4  ;;  %s1185_s29 = int_to_ptr.vmem [resolvable:$false] %s1184_s29 }
  0x42   : > { %s1186_s30 = scalar_lea.vmem %s1185_s29, 128  ;;  %p1187_p13 = scmp.lt.s32.totalorder %s195_s7, %s1185_s29 }
  0x43   : > { %p1182_p9 = pnand %p1180_p3, %p1168_p0  ;;  %p1188_p5 = scmp.lt.s32.totalorder %s1186_s30, %s1179_s28 }
  0x45   : > { %p1183_p7 = pneg %p1182_p9  ;;  %p1189_p4 = por %p1188_p5, %p1187_p13 }
  0x47   : > { %p1190_p8 = pnand %p1189_p4, %p1183_p7 }
  0x49   : > { %1193 = shalt.err (!%p1190_p8)
}
  0x4a   : > { %1063 = dma.hbm_to_vmem [thread:$0]  (!%p1396_p11), %s1394_s5, 64, %s195_s7, %s184_s9  }
  0x4b   : > { %p1562_p10 = scmp.ne.s32.totalorder %s1557_s23, 0 }
  0x4c   : > { %s1417_s6 = sand.u32 (!%p1562_p10), 1, %s1254_s16   ;;  %p1563_p4 = scmp.ne.s32.totalorder (!%p1562_p10), %s1555_s21, 0 }
  0x4d   : > { %203 = sbr.rel (%p1562_p10) target bundleno = 694 (0x2b6), region = 36  ;;  %s850_s10 = sshll.u32 (!%p1562_p10), %s1417_s6, 2 }
  0x4e   : > { %s206_s11 = scalar_lea.sflag (!%p1562_p10), [#allocation3], %s1417_s6  ;;  %s209_s12 = scalar_lea.vmem (!%p1562_p10), [#allocation2], %s850_s10 }
  0x52   : > { %1237 = dma.done.wait (%p1563_p4), %s206_s11, 64  }
  0x53   : > { %1239 = vsyncadd (%p1563_p4), %s206_s11, 4294967232  ;;  %p1564_p8 = scmp.eq.s32.totalorder %s1320_s19, 0 }
  0x55   : > { %1241 = dma.done.wait (%p1564_p8), [#allocation6], 6336   ;;  %p1565_p7 = pmov %p1564_p8 }
  0x56   : > { %v1271_v0 = vmov 0.0   ;;  %vm1272_vm0 = vmmov 0   ;;  %vm250_vm1 = vcmask 1043456   ;;  %vm246_vm2 = vcmask 31744   ;;  %v1437_v1 = vld [vmem:[%s209_s12] sm:$0xf] }
  0x57   : > { %1243 = vsyncadd (%p1565_p7), [#allocation6], 4294960960  ;;  %921 = vmatprep.subr.mxu0 %v1271_v0  ;;  %923 = vmatprep.mubr.msk.f32.mxu0 %vm1272_vm0, %v1271_v0  ;;  %v245_v2 = vld [vmem:[#allocation5] sm:$0xf]  ;;  %v339_v3 = vld [vmem:[#allocation7 + $0x78] sm:$0xff]  ;;  %s861_s5 = sshll.u32 %s1320_s19, 6 }
  0x58   : > { %926 = vmatprep.subr.mxu1 %v1271_v0  ;;  %958 = vmatprep.mubr.msk.f32.mxu1 %vm1272_vm0, %v1271_v0  ;;  %v412_v4 = vld [vmem:[#allocation5 + $0x4] sm:$0xf]  ;;  %v338_v5 = vld [vmem:[#allocation7 + $0x70] sm:$0xff]  ;;  %v337_v7 = vld [vmem:[#allocation7 + $0x68] sm:$0xff]  ;;  %s241_s7 = scalar_lea.vmem [#allocation8], %s850_s10  ;;  %s751_s20 = scalar_lea.hbm %s1550_s4, %s861_s5 }
  0x59   : > { %922 = vmatpush3.msk.msra.mxu0 %vm250_vm1, %v1437_v1  ;;  %927 = vmatpush3.msra.mxu1 %v339_v3  ;;  %v502_v6 = vld [vmem:[#allocation7 + $0xf8] sm:$0xff]  ;;  %v501_v8 = vld [vmem:[#allocation7 + $0xf0] sm:$0xff]  ;;  %v336_v9 = vld [vmem:[#allocation7 + $0x60] sm:$0xff]  ;;  %s753_s8 = sshll.u32 %s241_s7, 4  ;;  %s740_s27 = scalar_lea.sflag [#allocation4], %s1417_s6  ;;  %s754_s8 = int_to_ptr.vmem [resolvable:$true] %s753_s8 }
  0x5a   : > { %924 = vmatmul.mubr.msk.f32.vlgmr.msra.gmra.mxu0 %vm246_vm2, %v245_v2  ;;  %961 = vmatprep.subr.mxu0 %v1271_v0  ;;  %v500_v10 = vld [vmem:[#allocation7 + $0xe8] sm:$0xff]  ;;  %v335_v11 = vld [vmem:[#allocation7 + $0x58] sm:$0xff]  ;;  %v499_v12 = vld [vmem:[#allocation7 + $0xe0] sm:$0xff]  ;;  %s1194_s28 = scalar_lea.vmem %s754_s8, 64  ;;  %p1566_p0 = scmp.ne.s32.totalorder %s1560_s25, 0 }
  0x5b   : > { %962 = vmatpush3.msk.msra.mxu0 %vm250_vm1, %v1437_v1  ;;  %963 = vmatprep.mubr.msk.f32.mxu0 %vm1272_vm0, %v1271_v0  ;;  %v334_v13 = vld [vmem:[#allocation7 + $0x50] sm:$0xff]  ;;  %v498_v14 = vld [vmem:[#allocation7 + $0xd8] sm:$0xff]  ;;  %v333_v15 = vld [vmem:[#allocation7 + $0x48] sm:$0xff]  ;;  %p1195_p11 = scmp.ne.s32.totalorder %s754_s8, %s1194_s28  ;;  %s1273_s26 = smov [#allocation8]  }
  0x5c   : > { %966 = vmatprep.subr.mxu0 %v1271_v0  ;;  %928 = vmatprep.subr.mxu1 %v1271_v0  ;;  %v497_v16 = vld [vmem:[#allocation7 + $0xd0] sm:$0xff]  ;;  %v332_v17 = vld [vmem:[#allocation7 + $0x40] sm:$0xff]  ;;  %v496_v18 = vld [vmem:[#allocation7 + $0xc8] sm:$0xff]  ;;  %s1198_s19 = sshll.u32 %s1273_s26, 4  ;;  %s1199_s19 = int_to_ptr.vmem [resolvable:$false] %s1198_s19 }
  0x5d   : > { %929 = vmatpush3.msra.mxu1 %v338_v5  ;;  %v331_v19 = vld [vmem:[#allocation7 + $0x38] sm:$0xff]  ;;  %v495_v20 = vld [vmem:[#allocation7 + $0xc0] sm:$0xff]  ;;  %v330_v21 = vld [vmem:[#allocation7 + $0x30] sm:$0xff]  ;;  %p1196_p1 = pnand %p1195_p11, %p1566_p0  ;;  %s1200_s29 = scalar_lea.vmem %s1199_s19, 128 }
  0x5e   : > { %964 = vmatmul.mubr.msk.f32.vlgmr.msra.gmra.mxu0 %vm246_vm2, %v412_v4  ;;  %930 = vmatprep.subr.mxu1 %v1271_v0  ;;  %v494_v22 = vld [vmem:[#allocation7 + $0xb8] sm:$0xff]  ;;  %v329_v23 = vld [vmem:[#allocation7 + $0x28] sm:$0xff]  ;;  %v493_v24 = vld [vmem:[#allocation7 + $0xb0] sm:$0xff]  ;;  %p1201_p6 = scmp.lt.s32.totalorder %s754_s8, %s1199_s19  ;;  %p1202_p12 = scmp.lt.s32.totalorder %s1200_s29, %s1194_s28 }
  0x5f   : > { %967 = vmatpush3.msra.mxu0 %v502_v6  ;;  %931 = vmatpush3.msra.mxu1 %v337_v7  ;;  %v328_v25 = vld [vmem:[#allocation7 + $0x20] sm:$0xff]  ;;  %v492_v26 = vld [vmem:[#allocation7 + $0xa8] sm:$0xff]  ;;  %v327_v27 = vld [vmem:[#allocation7 + $0x18] sm:$0xff]  ;;  %p1197_p2 = pneg %p1196_p1 }
  0x60   : > { %968 = vmatprep.subr.mxu0 %v1271_v0  ;;  %932 = vmatprep.subr.mxu1 %v1271_v0  ;;  %v491_v28 = vld [vmem:[#allocation7 + $0xa0] sm:$0xff]  ;;  %v326_v29 = vld [vmem:[#allocation7 + $0x10] sm:$0xff]  ;;  %v490_v30 = vld [vmem:[#allocation7 + $0x98] sm:$0xff]  ;;  %p1203_p3 = por %p1202_p12, %p1201_p6 }
  0x61   : > { %969 = vmatpush3.msra.mxu0 %v501_v8  ;;  %933 = vmatpush3.msra.mxu1 %v336_v9  ;;  %v325_v31 = vld [vmem:[#allocation7 + $0x8] sm:$0xff]  ;;  %v324_v32 = vld [vmem:[#allocation7] sm:$0xff]  ;;  %v489_v33 = vld [vmem:[#allocation7 + $0x90] sm:$0xff] }
  0x62   : > { %970 = vmatprep.subr.mxu0 %v1271_v0  ;;  %934 = vmatprep.subr.mxu1 %v1271_v0  ;;  %v488_v34 = vld [vmem:[#allocation7 + $0x88] sm:$0xff]  ;;  %v487_v35 = vld [vmem:[#allocation7 + $0x80] sm:$0xff]  ;;  %v665_v36 = vld [vmem:[#allocation7 + $0x178] sm:$0xff]  ;;  %p1204_p9 = pnand %p1203_p3, %p1197_p2 }
  0x63   : > { %971 = vmatpush3.msra.mxu0 %v500_v10  ;;  %935 = vmatpush3.msra.mxu1 %v335_v11  ;;  %v664_v38 = vld [vmem:[#allocation7 + $0x170] sm:$0xff]  ;;  %v663_v41 = vld [vmem:[#allocation7 + $0x168] sm:$0xff]  ;;  %v575_v43 = vld [vmem:[#allocation5 + $0x8] sm:$0xf] }
  0x64   : > { %972 = vmatprep.subr.mxu0 %v1271_v0  ;;  %936 = vmatprep.subr.mxu1 %v1271_v0  ;;  %v662_v44 = vld [vmem:[#allocation7 + $0x160] sm:$0xff]  ;;  %v661_v45 = vld [vmem:[#allocation7 + $0x158] sm:$0xff]  ;;  %v660_v46 = vld [vmem:[#allocation7 + $0x150] sm:$0xff] }
  0x65   : > { %973 = vmatpush3.msra.mxu0 %v499_v12  ;;  %937 = vmatpush3.msra.mxu1 %v334_v13  ;;  %v659_v47 = vld [vmem:[#allocation7 + $0x148] sm:$0xff]  ;;  %v658_v48 = vld [vmem:[#allocation7 + $0x140] sm:$0xff]  ;;  %v657_v49 = vld [vmem:[#allocation7 + $0x138] sm:$0xff] }
  0x66   : > { %974 = vmatprep.subr.mxu0 %v1271_v0  ;;  %938 = vmatprep.subr.mxu1 %v1271_v0  ;;  %v656_v50 = vld [vmem:[#allocation7 + $0x130] sm:$0xff]  ;;  %v655_v51 = vld [vmem:[#allocation7 + $0x128] sm:$0xff]  ;;  %v654_v52 = vld [vmem:[#allocation7 + $0x120] sm:$0xff] }
  0x67   : > { %975 = vmatpush3.msra.mxu0 %v498_v14  ;;  %939 = vmatpush3.msra.mxu1 %v333_v15  ;;  %v653_v53 = vld [vmem:[#allocation7 + $0x118] sm:$0xff]  ;;  %v652_v54 = vld [vmem:[#allocation7 + $0x110] sm:$0xff]  ;;  %v651_v55 = vld [vmem:[#allocation7 + $0x108] sm:$0xff] }
  0x68   : > { %976 = vmatprep.subr.mxu0 %v1271_v0  ;;  %940 = vmatprep.subr.mxu1 %v1271_v0  ;;  %v650_v56 = vld [vmem:[#allocation7 + $0x100] sm:$0xff]  ;;  %v243_v57 = vld [vmem:[%s1549_s3] sm:$0xf] }
  0x69   : > { %977 = vmatpush3.msra.mxu0 %v497_v16  ;;  %941 = vmatpush3.msra.mxu1 %v332_v17  ;;  %v244_v58 = vadd.f32 %v243_v57, %v1437_v1 }
  0x6a   : > { %978 = vmatprep.subr.mxu0 %v1271_v0  ;;  %942 = vmatprep.subr.mxu1 %v1271_v0 }
  0x6b   : > { %979 = vmatpush3.msra.mxu0 %v496_v18  ;;  %943 = vmatpush3.msra.mxu1 %v331_v19 }
  0x6c   : > { %980 = vmatprep.subr.mxu0 %v1271_v0  ;;  %944 = vmatprep.subr.mxu1 %v1271_v0 }
  0x6d   : > { %981 = vmatpush3.msra.mxu0 %v495_v20  ;;  %945 = vmatpush3.msra.mxu1 %v330_v21 }
  0x6e   : > { %982 = vmatprep.subr.mxu0 %v1271_v0  ;;  %946 = vmatprep.subr.mxu1 %v1271_v0 }
  0x6f   : > { %983 = vmatpush3.msra.mxu0 %v494_v22  ;;  %947 = vmatpush3.msra.mxu1 %v329_v23 }
  0x70   : > { %984 = vmatprep.subr.mxu0 %v1271_v0  ;;  %948 = vmatprep.subr.mxu1 %v1271_v0 }
  0x71   : > { %985 = vmatpush3.msra.mxu0 %v493_v24  ;;  %949 = vmatpush3.msra.mxu1 %v328_v25 }
  0x72   : > { %986 = vmatprep.subr.mxu0 %v1271_v0  ;;  %950 = vmatprep.subr.mxu1 %v1271_v0 }
  0x73   : > { %987 = vmatpush3.msra.mxu0 %v492_v26  ;;  %951 = vmatpush3.msra.mxu1 %v327_v27 }
  0x74   : > { %988 = vmatprep.subr.mxu0 %v1271_v0  ;;  %952 = vmatprep.subr.mxu1 %v1271_v0 }
  0x75   : > { %989 = vmatpush3.msra.mxu0 %v491_v28  ;;  %953 = vmatpush3.msra.mxu1 %v326_v29 }
  0x76   : > { %990 = vmatprep.subr.mxu0 %v1271_v0  ;;  %954 = vmatprep.subr.mxu1 %v1271_v0 }
  0x77   : > { %991 = vmatpush3.msra.mxu0 %v490_v30  ;;  %955 = vmatpush3.msra.mxu1 %v325_v31 }
  0x78   : > { %992 = vmatprep.subr.mxu0 %v1271_v0  ;;  %956 = vmatprep.subr.mxu1 %v1271_v0 }
  0x79   : > { %998 = vmatprep.mubr.msk.f32.mxu0 %vm1272_vm0, %v1271_v0  ;;  %957 = vmatpush3.msra.mxu1 %v324_v32 }
  0x7a   : > { %993 = vmatpush3.msra.mxu0 %v489_v33  ;;  %1006 = vmatprep.subr.mxu1 %v1271_v0 }
  0x7b   : > { %994 = vmatprep.subr.mxu0 %v1271_v0 }
  0x7c   : > { %995 = vmatpush3.msra.mxu0 %v488_v34 }
  0x7d   : > { %996 = vmatprep.subr.mxu0 %v1271_v0 }
  0x7e   : > { %997 = vmatpush3.msra.mxu0 %v487_v35 }
  0x7f   : > { %1001 = vmatprep.subr.mxu0 %v1271_v0 }
 0x11a   : > { %v320_v37 = vpop.f32.mrf.mxu0 }
 0x11b   : > { %959 = vmatmul.mubr.f32.vlgmr.msra.gmra.mxu1 %v320_v37 }
 0x11c   : > { %v925_v39 = vpop.f32.mrf.mxu0  ;;  %1007 = vmatpush3.msra.mxu1 %v665_v36  ;;  %1038 = vmatprep.mubr.msk.f32.mxu1 %vm1272_vm0, %v1271_v0 }
 0x11d   : > { %1008 = vmatprep.subr.mxu1 %v1271_v0 }
 0x11e   : > { %v482_v40 = vpop.f32.mrf.mxu0  ;;  %1009 = vmatpush3.msra.mxu1 %v664_v38 }
 0x11f   : > { %999 = vmatmul.mubr.f32.vlgmr.msra.gmra.mxu0 %v482_v40  ;;  %1010 = vmatprep.subr.mxu1 %v1271_v0 }
 0x120   : > { %v965_v42 = vpop.f32.mrf.mxu0  ;;  %1002 = vmatpush3.msk.msra.mxu0 %vm250_vm1, %v1437_v1  ;;  %1003 = vmatprep.mubr.msk.f32.mxu0 %vm1272_vm0, %v1271_v0 }
 0x121   : > { %1011 = vmatpush3.msra.mxu1 %v663_v41 }
 0x122   : > { %1012 = vmatprep.subr.mxu1 %v1271_v0 }
 0x123   : > { %1004 = vmatmul.mubr.msk.f32.vlgmr.msra.gmra.mxu0 %vm246_vm2, %v575_v43  ;;  %1013 = vmatpush3.msra.mxu1 %v662_v44 }
 0x124   : > { %1014 = vmatprep.subr.mxu1 %v1271_v0 }
 0x125   : > { %1015 = vmatpush3.msra.mxu1 %v661_v45 }
 0x126   : > { %1016 = vmatprep.subr.mxu1 %v1271_v0 }
 0x127   : > { %1017 = vmatpush3.msra.mxu1 %v660_v46 }
 0x128   : > { %1018 = vmatprep.subr.mxu1 %v1271_v0 }
 0x129   : > { %1019 = vmatpush3.msra.mxu1 %v659_v47 }
 0x12a   : > { %1020 = vmatprep.subr.mxu1 %v1271_v0 }
 0x12b   : > { %1021 = vmatpush3.msra.mxu1 %v658_v48 }
 0x12c   : > { %1022 = vmatprep.subr.mxu1 %v1271_v0 }
 0x12d   : > { %1023 = vmatpush3.msra.mxu1 %v657_v49 }
 0x12e   : > { %1024 = vmatprep.subr.mxu1 %v1271_v0 }
 0x12f   : > { %1025 = vmatpush3.msra.mxu1 %v656_v50 }
 0x130   : > { %1026 = vmatprep.subr.mxu1 %v1271_v0 }
 0x131   : > { %1027 = vmatpush3.msra.mxu1 %v655_v51 }
 0x132   : > { %1028 = vmatprep.subr.mxu1 %v1271_v0 }
 0x133   : > { %1029 = vmatpush3.msra.mxu1 %v654_v52 }
 0x134   : > { %1030 = vmatprep.subr.mxu1 %v1271_v0 }
 0x135   : > { %1031 = vmatpush3.msra.mxu1 %v653_v53 }
 0x136   : > { %1032 = vmatprep.subr.mxu1 %v1271_v0 }
 0x137   : > { %1033 = vmatpush3.msra.mxu1 %v652_v54 }
 0x138   : > { %1034 = vmatprep.subr.mxu1 %v1271_v0 }
 0x139   : > { %1035 = vmatpush3.msra.mxu1 %v651_v55 }
 0x13a   : > { %1036 = vmatprep.subr.mxu1 %v1271_v0 }
 0x13b   : > { %1037 = vmatpush3.msra.mxu1 %v650_v56 }
 0x1db   : > { %v406_v59 = vpop.f32.mrf.mxu1 }
 0x1dc   : > { %v410_v61 = vadd.f32 %v406_v59, %v244_v58 }
 0x1dd   : > { %v960_v60 = vpop.f32.mrf.mxu1 }
 0x1df   : > { %v569_v62 = vpop.f32.mrf.mxu0 }
 0x1e0   : > { %v573_v63 = vadd.f32 %v569_v62, %v410_v61 }
 0x1e1   : > { %v1000_v2 = vpop.f32.mrf.mxu0 }
 0x1e3   : > { %v645_v3 = vpop.f32.mrf.mxu0 }
 0x1e4   : > { %1039 = vmatmul.mubr.f32.vlgmr.msra.gmra.mxu1 %v645_v3 }
 0x1e5   : > { %v1005_v0 = vpop.f32.mrf.mxu0 }
 0x2a4   : > { %v732_v4 = vpop.f32.mrf.mxu1 }
 0x2a5   : > { %v736_v5 = vadd.f32 %v732_v4, %v573_v63 }
 0x2a6   : > { %v1040_v6 = vpop.f32.mrf.mxu1 }
 0x2a7   : > { %v737_v7 = vmax.f32 %v736_v5, 0.0 }
 0x2a9   : > { %738 = vst [vmem:[%s241_s7] sm:$0xf] %v737_v7 }
 0x2aa   : > { %1207 = shalt.err (!%p1204_p9)
}
 0x2ab   : > { %s1208_s30 = scalar_lea.hbm %s751_s20, 64  ;;  %s1212_s11 = scalar_lea.hbm %s1550_s4, 128 }
 0x2ac   : > { %p1209_p13 = scmp.ne.s32.totalorder %s751_s20, %s1208_s30  ;;  %p1213_p4 = scmp.lt.s32.totalorder %s751_s20, %s1550_s4 }
 0x2ad   : > { %p1214_p8 = scmp.lt.s32.totalorder %s1212_s11, %s1208_s30 }
 0x2ae   : > { %p1210_p5 = pnand %p1209_p13, %p1566_p0 }
 0x2af   : > { %p1215_p7 = por %p1214_p8, %p1213_p4 }
 0x2b0   : > { %p1211_p10 = pneg %p1210_p5 }
 0x2b2   : > { %p1216_p11 = pnand %p1215_p7, %p1211_p10 }
 0x2b4   : > { %1219 = shalt.err (!%p1216_p11)
}
 0x2b5   : > { %1051 = dma.vmem_to_hbm [thread:$0]  (%p1566_p0), %s754_s8, 64, %s751_s20, %s740_s27  }
 0x2b6 PF: > { %s765_s23 = sand.u32 1, %s1250_s15   ;;  %p1567_p1 = scmp.ne.s32.totalorder %s1556_s22, 0 }
 0x2b7   : > { %p1568_p2 = scmp.ge.s32.totalorder %s1262_s18, 2  ;;  %s766_s5 = scalar_lea.sflag [#allocation4], %s765_s23 }
 0x2b9   : > { %p1065_p6 = pnand %p1568_p2, %p1567_p1 }
 0x2bb   : > { %p1066_p12 = pneg %p1065_p6 }
 0x2bd   : > { %1245 = dma.done.wait (%p1066_p12), %s766_s5, 64  }
 0x2be   : > { %1247 = vsyncadd (%p1066_p12), %s766_s5, 4294967232  ;;  %p18_p3 = scmp.ge.s32.totalorder %s1371_s13, 4   ;;  %s1569_s15 = smov %s1254_s16 }
 0x2bf   : > { %s1570_s16 = smov %s1258_s17  ;;  %s1571_s17 = smov %s1380_s24 }
 0x2c0   : > { %s1572_s18 = smov %s1371_s13  ;;  %20 = sbr.rel (!%p18_p3) target bundleno = 6 (0x6), region = 93 }
 0x2c5   :  { %771 = vsyncpa [#allocation3], 1 }
 0x2c6   :  { %773 = vsyncpa [#allocation3 + $0x1], 1 }
 0x2c7   :  { %774 = vsyncpa [#allocation6], 1 }
 0x2c8   :  { %775 = vsyncpa [#allocation4], 1 }
 0x2c9   :  { %777 = vsyncpa [#allocation4 + $0x1], 1 }

</bundles_post_ra>
